<compile_context>
chip_gen: v7x
topology: tpu7x:2x2x1
jax: 0.10.0
libtpu: 0.0.40
codegen_flags: <defaults>
</compile_context>

<pallas_src>
import jax
import jax.numpy as jnp
from jax.experimental import pallas as pl
from jax.experimental.pallas import tpu as pltpu

# ---- hyperparams (small, consistent with the module) ----
EMBED_DIM = 32
NUM_HEADS = 4
HEAD_DIM = EMBED_DIM // NUM_HEADS
SEQ_LEN = 8
BATCH = 2
HIDDEN = 4 * EMBED_DIM
LN_EPS = 1e-5  # torch.nn.LayerNorm default

# Rows of the packed (8, 128) bias slab.
_ROW_LN1_W, _ROW_LN1_B, _ROW_LN2_W, _ROW_LN2_B = 0, 1, 2, 3
_ROW_BO, _ROW_B2, _ROW_B1, _ROW_BQKV = 4, 5, 6, 7


def _layernorm(x, w, b):
    # x: (R, D), w/b: (1, D). torch LayerNorm: biased variance, eps inside sqrt.
    mu = jnp.mean(x, axis=-1, keepdims=True)
    var = jnp.mean((x - mu) ** 2, axis=-1, keepdims=True)
    return (x - mu) * jax.lax.rsqrt(var + LN_EPS) * w + b


def encoder_kernel(x_ref, wqkv_ref, wo_ref, w1_ref, w2_ref, bias_ref,
                   out_ref, attn_scratch):
    BN = BATCH * SEQ_LEN
    D = EMBED_DIM

    x = x_ref[...]                       # (B*N, D)
    biases = bias_ref[...]               # (8, 128) zero-padded slab

    ln1_w = biases[_ROW_LN1_W:_ROW_LN1_W + 1, :D]
    ln1_b = biases[_ROW_LN1_B:_ROW_LN1_B + 1, :D]
    ln2_w = biases[_ROW_LN2_W:_ROW_LN2_W + 1, :D]
    ln2_b = biases[_ROW_LN2_B:_ROW_LN2_B + 1, :D]
    bo = biases[_ROW_BO:_ROW_BO + 1, :D]
    b2 = biases[_ROW_B2:_ROW_B2 + 1, :D]
    b1 = biases[_ROW_B1:_ROW_B1 + 1, :HIDDEN]
    bqkv = biases[_ROW_BQKV:_ROW_BQKV + 1, :3 * D]

    # ---- sublayer 1: LayerNorm -> fused QKV -> batched MHA -> Wo -> residual ----
    h1 = _layernorm(x, ln1_w, ln1_b)
    qkv = jnp.dot(h1, wqkv_ref[...], preferred_element_type=jnp.float32) + bqkv  # (BN, 3D)
    qkv3 = qkv.reshape(BATCH, SEQ_LEN, 3 * D)  # leading-dim split: layout no-op

    # NOTE: PyTorch module scales by embed_dim**-0.5 (not head_dim**-0.5).
    scale = EMBED_DIM ** (-0.5)

    for h in range(NUM_HEADS):  # static unrolled loop over heads
        lo = h * HEAD_DIM
        q_h = qkv3[:, :, lo:lo + HEAD_DIM]                    # (B, N, hd)
        k_h = qkv3[:, :, D + lo:D + lo + HEAD_DIM]            # (B, N, hd)
        v_h = qkv3[:, :, 2 * D + lo:2 * D + lo + HEAD_DIM]    # (B, N, hd)

        s = jnp.einsum("bqd,bkd->bqk", q_h, k_h,
                       preferred_element_type=jnp.float32) * scale   # (B, N, N)
        s = s - jnp.max(s, axis=-1, keepdims=True)
        p = jnp.exp(s)
        p = p * pl.reciprocal(jnp.sum(p, axis=-1, keepdims=True), approx=True)
        o_h = jnp.einsum("bqk,bkd->bqd", p, v_h,
                         preferred_element_type=jnp.float32)          # (B, N, hd)
        # Write head output directly into its final column slot (no concatenate).
        attn_scratch[:, lo:lo + HEAD_DIM] = o_h.reshape(BN, HEAD_DIM)

    # TODO(synk): nn.Dropout(0.1) is identity in eval mode; intentionally omitted.
    attn = jnp.dot(attn_scratch[...], wo_ref[...],
                   preferred_element_type=jnp.float32) + bo
    x2 = x + attn

    # ---- sublayer 2: LayerNorm -> MLP (Linear -> ReLU -> Linear) -> residual ----
    h2 = _layernorm(x2, ln2_w, ln2_b)
    hid = jnp.maximum(jnp.dot(h2, w1_ref[...], preferred_element_type=jnp.float32) + b1, 0.0)
    mlp = jnp.dot(hid, w2_ref[...], preferred_element_type=jnp.float32) + b2

    out_ref[...] = x2 + mlp


def _pack_operands(params):
    """Fuse QKV weights and pack every small 1-D param into one (8, 128) slab."""
    D = EMBED_DIM
    wqkv = jnp.concatenate([params["wq"], params["wk"], params["wv"]], axis=1)  # (D, 3D)
    bqkv = jnp.concatenate([params["bq"], params["bk"], params["bv"]], axis=1).reshape(-1)

    slab = jnp.zeros((8, 128), jnp.float32)
    slab = slab.at[_ROW_LN1_W, :D].set(params["ln1_w"].reshape(-1))
    slab = slab.at[_ROW_LN1_B, :D].set(params["ln1_b"].reshape(-1))
    slab = slab.at[_ROW_LN2_W, :D].set(params["ln2_w"].reshape(-1))
    slab = slab.at[_ROW_LN2_B, :D].set(params["ln2_b"].reshape(-1))
    slab = slab.at[_ROW_BO, :D].set(params["bo"].reshape(-1))
    slab = slab.at[_ROW_B2, :D].set(params["b2"].reshape(-1))
    slab = slab.at[_ROW_B1, :HIDDEN].set(params["b1"].reshape(-1))
    slab = slab.at[_ROW_BQKV, :3 * D].set(bqkv)
    return wqkv, params["wo"], params["w1"], params["w2"], slab


@jax.jit
def encoder_forward(x, params):
    B, N, D = x.shape
    assert D == EMBED_DIM and 3 * D <= 128 and 4 * D == HIDDEN <= 128
    BN = B * N

    wqkv, wo, w1, w2, slab = _pack_operands(params)
    x2d = x.reshape(BN, D)  # free metadata reshape outside the kernel

    vmem = pl.BlockSpec(memory_space=pltpu.MemorySpace.VMEM)

    proj_flops = 2 * BN * D * (3 * D) + 2 * BN * D * D + 2 * BN * D * HIDDEN + 2 * BN * HIDDEN * D
    attn_flops = 2 * (2 * B * NUM_HEADS * N * N * HEAD_DIM)
    bytes_accessed = 4 * (x2d.size + wqkv.size + wo.size + w1.size + w2.size + slab.size + BN * D)

    # Single kernel invocation (no grid): with B*N=16 rows the whole block fits in
    # VMEM and per-grid-step overhead would dominate the compute.
    out2d = pl.pallas_call(
        encoder_kernel,
        out_shape=jax.ShapeDtypeStruct((BN, D), jnp.float32),
        in_specs=[vmem] * 6,
        out_specs=vmem,
        scratch_shapes=[pltpu.VMEM((BN, D), jnp.float32)],
        cost_estimate=pl.CostEstimate(
            flops=proj_flops + attn_flops,
            transcendentals=B * NUM_HEADS * N * N + B * NUM_HEADS * N,
            bytes_accessed=bytes_accessed,
        ),
    )(x2d, wqkv, wo, w1, w2, slab)
    return out2d.reshape(B, N, D)


def init_params(key, embed_dim):
    # Deterministic synthetic parameters. Linear weights stored as (in, out)
    # (i.e. already transposed relative to torch's (out, in)).
    ks = jax.random.split(key, 12)
    s = 0.05
    D, H4 = embed_dim, embed_dim * 4
    p = {
        "ln1_w": jnp.ones((1, D), jnp.float32),
        "ln1_b": jnp.zeros((1, D), jnp.float32),
        "wq": s * jax.random.normal(ks[0], (D, D), jnp.float32),
        "bq": s * jax.random.normal(ks[1], (1, D), jnp.float32),
        "wk": s * jax.random.normal(ks[2], (D, D), jnp.float32),
        "bk": s * jax.random.normal(ks[3], (1, D), jnp.float32),
        "wv": s * jax.random.normal(ks[4], (D, D), jnp.float32),
        "bv": s * jax.random.normal(ks[5], (1, D), jnp.float32),
        "wo": s * jax.random.normal(ks[6], (D, D), jnp.float32),
        "bo": s * jax.random.normal(ks[7], (1, D), jnp.float32),
        "ln2_w": jnp.ones((1, D), jnp.float32),
        "ln2_b": jnp.zeros((1, D), jnp.float32),
        "w1": s * jax.random.normal(ks[8], (D, H4), jnp.float32),
        "b1": s * jax.random.normal(ks[9], (1, H4), jnp.float32),
        "w2": s * jax.random.normal(ks[10], (H4, D), jnp.float32),
        "b2": s * jax.random.normal(ks[11], (1, D), jnp.float32),
    }
    return p


def encoder_reference(x, params):
    """Plain-JAX reference of the PyTorch forward (dropout = identity)."""
    def ln(v, w, b):
        mu = jnp.mean(v, axis=-1, keepdims=True)
        var = jnp.mean((v - mu) ** 2, axis=-1, keepdims=True)
        return (v - mu) / jnp.sqrt(var + LN_EPS) * w + b

    B, N, D = x.shape
    h1 = ln(x, params["ln1_w"], params["ln1_b"])
    q = h1 @ params["wq"] + params["bq"]
    k = h1 @ params["wk"] + params["bk"]
    v = h1 @ params["wv"] + params["bv"]
    qh = q.reshape(B, N, NUM_HEADS, HEAD_DIM).transpose(0, 2, 1, 3)
    kh = k.reshape(B, N, NUM_HEADS, HEAD_DIM).transpose(0, 2, 1, 3)
    vh = v.reshape(B, N, NUM_HEADS, HEAD_DIM).transpose(0, 2, 1, 3)
    scores = jnp.einsum("bhqd,bhkd->bhqk", qh, kh) * (EMBED_DIM ** -0.5)
    w = jax.nn.softmax(scores, axis=-1)
    o = jnp.einsum("bhqk,bhkd->bhqd", w, vh).transpose(0, 2, 1, 3).reshape(B, N, D)
    attn = o @ params["wo"] + params["bo"]
    x2 = x + attn
    h2 = ln(x2, params["ln2_w"], params["ln2_b"])
    mlp = jnp.maximum(h2 @ params["w1"] + params["b1"], 0.0) @ params["w2"] + params["b2"]
    return x2 + mlp


if __name__ == "__main__":
    key = jax.random.PRNGKey(0)
    k_x, k_p = jax.random.split(key)
    x = jax.random.normal(k_x, (BATCH, SEQ_LEN, EMBED_DIM), jnp.float32)
    params = init_params(k_p, EMBED_DIM)

    out = encoder_forward(x, params)
    out = jax.block_until_ready(out)

    ref = encoder_reference(x, params)
    assert out.shape == (BATCH, SEQ_LEN, EMBED_DIM)
    # Tolerance loosened slightly vs exact JAX reference because the in-kernel
    # softmax uses the approximate EUP reciprocal (pl.reciprocal(approx=True)).
    assert jnp.allclose(out, ref, atol=1e-3, rtol=1e-3), "mismatch vs JAX reference"

    print("KERNEL_OK")
</pallas_src>

<mosaic_0001>
module attributes {stable_mosaic.version = 11 : i64} {
  func.func @encoder_kernel(%arg0: memref<16x32xf32, #tpu.memory_space<vmem>>, %arg1: memref<32x96xf32, #tpu.memory_space<vmem>>, %arg2: memref<32x32xf32, #tpu.memory_space<vmem>>, %arg3: memref<32x128xf32, #tpu.memory_space<vmem>>, %arg4: memref<128x32xf32, #tpu.memory_space<vmem>>, %arg5: memref<8x128xf32, #tpu.memory_space<vmem>>, %arg6: memref<16x32xf32, #tpu.memory_space<vmem>>, %arg7: memref<16x32xf32, #tpu.memory_space<vmem>>) attributes {dimension_semantics = [], scalar_prefetch = 0 : i64, scratch_operands = 1 : i64, tpu.core_type = #tpu.core_type<tc>} {
    %c0 = arith.constant 0 : index
    %c0_0 = arith.constant 0 : index
    %0 = vector.load %arg0[%c0, %c0_0] : memref<16x32xf32, #tpu.memory_space<vmem>>, vector<16x32xf32>
    %c0_1 = arith.constant 0 : index
    %c0_2 = arith.constant 0 : index
    %1 = vector.load %arg5[%c0_1, %c0_2] : memref<8x128xf32, #tpu.memory_space<vmem>>, vector<8x128xf32>
    %2 = vector.extract_strided_slice %1 {offsets = [0, 0], sizes = [1, 32], strides = [1, 1]} : vector<8x128xf32> to vector<1x32xf32>
    %3 = vector.extract_strided_slice %1 {offsets = [1, 0], sizes = [1, 32], strides = [1, 1]} : vector<8x128xf32> to vector<1x32xf32>
    %4 = vector.extract_strided_slice %1 {offsets = [2, 0], sizes = [1, 32], strides = [1, 1]} : vector<8x128xf32> to vector<1x32xf32>
    %5 = vector.extract_strided_slice %1 {offsets = [3, 0], sizes = [1, 32], strides = [1, 1]} : vector<8x128xf32> to vector<1x32xf32>
    %6 = vector.extract_strided_slice %1 {offsets = [4, 0], sizes = [1, 32], strides = [1, 1]} : vector<8x128xf32> to vector<1x32xf32>
    %7 = vector.extract_strided_slice %1 {offsets = [5, 0], sizes = [1, 32], strides = [1, 1]} : vector<8x128xf32> to vector<1x32xf32>
    %8 = vector.extract_strided_slice %1 {offsets = [6, 0], sizes = [1, 128], strides = [1, 1]} : vector<8x128xf32> to vector<1x128xf32>
    %9 = vector.extract_strided_slice %1 {offsets = [7, 0], sizes = [1, 96], strides = [1, 1]} : vector<8x128xf32> to vector<1x96xf32>
    %cst = arith.constant dense<0.000000e+00> : vector<16xf32>
    %10 = vector.multi_reduction <add>, %0, %cst [1] : vector<16x32xf32> to vector<16xf32>
    %11 = vector.shape_cast %10 : vector<16xf32> to vector<16x1xf32>
    %cst_3 = arith.constant 3.200000e+01 : f32
    %12 = vector.broadcast %cst_3 : f32 to vector<16x1xf32>
    %13 = arith.divf %11, %12 : vector<16x1xf32>
    %14 = vector.broadcast %13 : vector<16x1xf32> to vector<16x32xf32>
    %15 = arith.subf %0, %14 : vector<16x32xf32>
    %16 = arith.mulf %15, %15 : vector<16x32xf32>
    %cst_4 = arith.constant dense<0.000000e+00> : vector<16xf32>
    %17 = vector.multi_reduction <add>, %16, %cst_4 [1] : vector<16x32xf32> to vector<16xf32>
    %18 = vector.shape_cast %17 : vector<16xf32> to vector<16x1xf32>
    %cst_5 = arith.constant 3.200000e+01 : f32
    %19 = vector.broadcast %cst_5 : f32 to vector<16x1xf32>
    %20 = arith.divf %18, %19 : vector<16x1xf32>
    %21 = vector.broadcast %13 : vector<16x1xf32> to vector<16x32xf32>
    %22 = arith.subf %0, %21 : vector<16x32xf32>
    %cst_6 = arith.constant 9.99999974E-6 : f32
    %23 = vector.broadcast %cst_6 : f32 to vector<16x1xf32>
    %24 = arith.addf %20, %23 : vector<16x1xf32>
    %25 = math.rsqrt %24 : vector<16x1xf32>
    %26 = vector.broadcast %25 : vector<16x1xf32> to vector<16x32xf32>
    %27 = arith.mulf %22, %26 : vector<16x32xf32>
    %28 = vector.broadcast %2 : vector<1x32xf32> to vector<16x32xf32>
    %29 = arith.mulf %27, %28 : vector<16x32xf32>
    %30 = vector.broadcast %3 : vector<1x32xf32> to vector<16x32xf32>
    %31 = arith.addf %29, %30 : vector<16x32xf32>
    %c0_7 = arith.constant 0 : index
    %c0_8 = arith.constant 0 : index
    %32 = vector.load %arg1[%c0_7, %c0_8] : memref<32x96xf32, #tpu.memory_space<vmem>>, vector<32x96xf32>
    %cst_9 = arith.constant dense<0.000000e+00> : vector<16x96xf32>
    %33 = tpu.matmul %31, %32, %cst_9 {dimension_numbers = #tpu.dot_dimension_numbers<[1], [0], [0], [1], [0, 0, 1, 1], [], []>} : vector<16x32xf32>, vector<32x96xf32>, vector<16x96xf32> -> vector<16x96xf32>
    %34 = vector.broadcast %9 : vector<1x96xf32> to vector<16x96xf32>
    %35 = arith.addf %33, %34 : vector<16x96xf32>
    %36 = vector.shape_cast %35 : vector<16x96xf32> to vector<2x8x96xf32>
    %37 = vector.extract_strided_slice %36 {offsets = [0, 0, 0], sizes = [2, 8, 8], strides = [1, 1, 1]} : vector<2x8x96xf32> to vector<2x8x8xf32>
    %38 = vector.extract_strided_slice %36 {offsets = [0, 0, 32], sizes = [2, 8, 8], strides = [1, 1, 1]} : vector<2x8x96xf32> to vector<2x8x8xf32>
    %39 = vector.extract_strided_slice %36 {offsets = [0, 0, 64], sizes = [2, 8, 8], strides = [1, 1, 1]} : vector<2x8x96xf32> to vector<2x8x8xf32>
    "tpu.trace_start"() <{level = 10 : i32, message = "bqd,bkd->bqk"}> : () -> ()
    %cst_10 = arith.constant dense<0.000000e+00> : vector<2x8x8xf32>
    %40 = tpu.matmul %37, %38, %cst_10 {dimension_numbers = #tpu.dot_dimension_numbers<[2], [2], [1], [1], [0, 0, 0, 1, 1, 1], [0], [0]>} : vector<2x8x8xf32>, vector<2x8x8xf32>, vector<2x8x8xf32> -> vector<2x8x8xf32>
    "tpu.trace_stop"() : () -> ()
    %cst_11 = arith.constant 0.176776692 : f32
    %41 = vector.broadcast %cst_11 : f32 to vector<2x8x8xf32>
    %42 = arith.mulf %40, %41 : vector<2x8x8xf32>
    %cst_12 = arith.constant dense<0xFF800000> : vector<2x8xf32>
    %43 = vector.multi_reduction <maximumf>, %42, %cst_12 [2] : vector<2x8x8xf32> to vector<2x8xf32>
    %44 = vector.shape_cast %43 : vector<2x8xf32> to vector<2x8x1xf32>
    %45 = vector.broadcast %44 : vector<2x8x1xf32> to vector<2x8x8xf32>
    %46 = arith.subf %42, %45 : vector<2x8x8xf32>
    %47 = math.exp %46 : vector<2x8x8xf32>
    %cst_13 = arith.constant dense<0.000000e+00> : vector<2x8xf32>
    %48 = vector.multi_reduction <add>, %47, %cst_13 [2] : vector<2x8x8xf32> to vector<2x8xf32>
    %49 = vector.shape_cast %48 : vector<2x8xf32> to vector<2x8x1xf32>
    %50 = tpu.reciprocal %49 {approx = true} : vector<2x8x1xf32> -> vector<2x8x1xf32>
    %51 = vector.broadcast %50 : vector<2x8x1xf32> to vector<2x8x8xf32>
    %52 = arith.mulf %47, %51 : vector<2x8x8xf32>
    "tpu.trace_start"() <{level = 10 : i32, message = "bqk,bkd->bqd"}> : () -> ()
    %cst_14 = arith.constant dense<0.000000e+00> : vector<2x8x8xf32>
    %53 = tpu.matmul %52, %39, %cst_14 {dimension_numbers = #tpu.dot_dimension_numbers<[2], [1], [1], [2], [0, 0, 0, 1, 1, 2], [0], [0]>} : vector<2x8x8xf32>, vector<2x8x8xf32>, vector<2x8x8xf32> -> vector<2x8x8xf32>
    "tpu.trace_stop"() : () -> ()
    %54 = vector.shape_cast %53 : vector<2x8x8xf32> to vector<16x8xf32>
    %c0_15 = arith.constant 0 : index
    %c0_16 = arith.constant 0 : index
    %55 = vector.load %arg7[%c0_15, %c0_16] : memref<16x32xf32, #tpu.memory_space<vmem>>, vector<16x8xf32>
    tpu.vector_store %arg7[%c0_15, %c0_16], %54 {strides = array<i32>} : memref<16x32xf32, #tpu.memory_space<vmem>>, vector<16x8xf32>,
    %56 = vector.extract_strided_slice %36 {offsets = [0, 0, 8], sizes = [2, 8, 8], strides = [1, 1, 1]} : vector<2x8x96xf32> to vector<2x8x8xf32>
    %57 = vector.extract_strided_slice %36 {offsets = [0, 0, 40], sizes = [2, 8, 8], strides = [1, 1, 1]} : vector<2x8x96xf32> to vector<2x8x8xf32>
    %58 = vector.extract_strided_slice %36 {offsets = [0, 0, 72], sizes = [2, 8, 8], strides = [1, 1, 1]} : vector<2x8x96xf32> to vector<2x8x8xf32>
    "tpu.trace_start"() <{level = 10 : i32, message = "bqd,bkd->bqk"}> : () -> ()
    %cst_17 = arith.constant dense<0.000000e+00> : vector<2x8x8xf32>
    %59 = tpu.matmul %56, %57, %cst_17 {dimension_numbers = #tpu.dot_dimension_numbers<[2], [2], [1], [1], [0, 0, 0, 1, 1, 1], [0], [0]>} : vector<2x8x8xf32>, vector<2x8x8xf32>, vector<2x8x8xf32> -> vector<2x8x8xf32>
    "tpu.trace_stop"() : () -> ()
    %cst_18 = arith.constant 0.176776692 : f32
    %60 = vector.broadcast %cst_18 : f32 to vector<2x8x8xf32>
    %61 = arith.mulf %59, %60 : vector<2x8x8xf32>
    %cst_19 = arith.constant dense<0xFF800000> : vector<2x8xf32>
    %62 = vector.multi_reduction <maximumf>, %61, %cst_19 [2] : vector<2x8x8xf32> to vector<2x8xf32>
    %63 = vector.shape_cast %62 : vector<2x8xf32> to vector<2x8x1xf32>
    %64 = vector.broadcast %63 : vector<2x8x1xf32> to vector<2x8x8xf32>
    %65 = arith.subf %61, %64 : vector<2x8x8xf32>
    %66 = math.exp %65 : vector<2x8x8xf32>
    %cst_20 = arith.constant dense<0.000000e+00> : vector<2x8xf32>
    %67 = vector.multi_reduction <add>, %66, %cst_20 [2] : vector<2x8x8xf32> to vector<2x8xf32>
    %68 = vector.shape_cast %67 : vector<2x8xf32> to vector<2x8x1xf32>
    %69 = tpu.reciprocal %68 {approx = true} : vector<2x8x1xf32> -> vector<2x8x1xf32>
    %70 = vector.broadcast %69 : vector<2x8x1xf32> to vector<2x8x8xf32>
    %71 = arith.mulf %66, %70 : vector<2x8x8xf32>
    "tpu.trace_start"() <{level = 10 : i32, message = "bqk,bkd->bqd"}> : () -> ()
    %cst_21 = arith.constant dense<0.000000e+00> : vector<2x8x8xf32>
    %72 = tpu.matmul %71, %58, %cst_21 {dimension_numbers = #tpu.dot_dimension_numbers<[2], [1], [1], [2], [0, 0, 0, 1, 1, 2], [0], [0]>} : vector<2x8x8xf32>, vector<2x8x8xf32>, vector<2x8x8xf32> -> vector<2x8x8xf32>
    "tpu.trace_stop"() : () -> ()
    %73 = vector.shape_cast %72 : vector<2x8x8xf32> to vector<16x8xf32>
    %c0_22 = arith.constant 0 : index
    %c8 = arith.constant 8 : index
    %74 = vector.load %arg7[%c0_22, %c8] : memref<16x32xf32, #tpu.memory_space<vmem>>, vector<16x8xf32>
    tpu.vector_store %arg7[%c0_22, %c8], %73 {strides = array<i32>} : memref<16x32xf32, #tpu.memory_space<vmem>>, vector<16x8xf32>,
    %75 = vector.extract_strided_slice %36 {offsets = [0, 0, 16], sizes = [2, 8, 8], strides = [1, 1, 1]} : vector<2x8x96xf32> to vector<2x8x8xf32>
    %76 = vector.extract_strided_slice %36 {offsets = [0, 0, 48], sizes = [2, 8, 8], strides = [1, 1, 1]} : vector<2x8x96xf32> to vector<2x8x8xf32>
    %77 = vector.extract_strided_slice %36 {offsets = [0, 0, 80], sizes = [2, 8, 8], strides = [1, 1, 1]} : vector<2x8x96xf32> to vector<2x8x8xf32>
    "tpu.trace_start"() <{level = 10 : i32, message = "bqd,bkd->bqk"}> : () -> ()
    %cst_23 = arith.constant dense<0.000000e+00> : vector<2x8x8xf32>
    %78 = tpu.matmul %75, %76, %cst_23 {dimension_numbers = #tpu.dot_dimension_numbers<[2], [2], [1], [1], [0, 0, 0, 1, 1, 1], [0], [0]>} : vector<2x8x8xf32>, vector<2x8x8xf32>, vector<2x8x8xf32> -> vector<2x8x8xf32>
    "tpu.trace_stop"() : () -> ()
    %cst_24 = arith.constant 0.176776692 : f32
    %79 = vector.broadcast %cst_24 : f32 to vector<2x8x8xf32>
    %80 = arith.mulf %78, %79 : vector<2x8x8xf32>
    %cst_25 = arith.constant dense<0xFF800000> : vector<2x8xf32>
    %81 = vector.multi_reduction <maximumf>, %80, %cst_25 [2] : vector<2x8x8xf32> to vector<2x8xf32>
    %82 = vector.shape_cast %81 : vector<2x8xf32> to vector<2x8x1xf32>
    %83 = vector.broadcast %82 : vector<2x8x1xf32> to vector<2x8x8xf32>
    %84 = arith.subf %80, %83 : vector<2x8x8xf32>
    %85 = math.exp %84 : vector<2x8x8xf32>
    %cst_26 = arith.constant dense<0.000000e+00> : vector<2x8xf32>
    %86 = vector.multi_reduction <add>, %85, %cst_26 [2] : vector<2x8x8xf32> to vector<2x8xf32>
    %87 = vector.shape_cast %86 : vector<2x8xf32> to vector<2x8x1xf32>
    %88 = tpu.reciprocal %87 {approx = true} : vector<2x8x1xf32> -> vector<2x8x1xf32>
    %89 = vector.broadcast %88 : vector<2x8x1xf32> to vector<2x8x8xf32>
    %90 = arith.mulf %85, %89 : vector<2x8x8xf32>
    "tpu.trace_start"() <{level = 10 : i32, message = "bqk,bkd->bqd"}> : () -> ()
    %cst_27 = arith.constant dense<0.000000e+00> : vector<2x8x8xf32>
    %91 = tpu.matmul %90, %77, %cst_27 {dimension_numbers = #tpu.dot_dimension_numbers<[2], [1], [1], [2], [0, 0, 0, 1, 1, 2], [0], [0]>} : vector<2x8x8xf32>, vector<2x8x8xf32>, vector<2x8x8xf32> -> vector<2x8x8xf32>
    "tpu.trace_stop"() : () -> ()
    %92 = vector.shape_cast %91 : vector<2x8x8xf32> to vector<16x8xf32>
    %c0_28 = arith.constant 0 : index
    %c16 = arith.constant 16 : index
    %93 = vector.load %arg7[%c0_28, %c16] : memref<16x32xf32, #tpu.memory_space<vmem>>, vector<16x8xf32>
    tpu.vector_store %arg7[%c0_28, %c16], %92 {strides = array<i32>} : memref<16x32xf32, #tpu.memory_space<vmem>>, vector<16x8xf32>,
    %94 = vector.extract_strided_slice %36 {offsets = [0, 0, 24], sizes = [2, 8, 8], strides = [1, 1, 1]} : vector<2x8x96xf32> to vector<2x8x8xf32>
    %95 = vector.extract_strided_slice %36 {offsets = [0, 0, 56], sizes = [2, 8, 8], strides = [1, 1, 1]} : vector<2x8x96xf32> to vector<2x8x8xf32>
    %96 = vector.extract_strided_slice %36 {offsets = [0, 0, 88], sizes = [2, 8, 8], strides = [1, 1, 1]} : vector<2x8x96xf32> to vector<2x8x8xf32>
    "tpu.trace_start"() <{level = 10 : i32, message = "bqd,bkd->bqk"}> : () -> ()
    %cst_29 = arith.constant dense<0.000000e+00> : vector<2x8x8xf32>
    %97 = tpu.matmul %94, %95, %cst_29 {dimension_numbers = #tpu.dot_dimension_numbers<[2], [2], [1], [1], [0, 0, 0, 1, 1, 1], [0], [0]>} : vector<2x8x8xf32>, vector<2x8x8xf32>, vector<2x8x8xf32> -> vector<2x8x8xf32>
    "tpu.trace_stop"() : () -> ()
    %cst_30 = arith.constant 0.176776692 : f32
    %98 = vector.broadcast %cst_30 : f32 to vector<2x8x8xf32>
    %99 = arith.mulf %97, %98 : vector<2x8x8xf32>
    %cst_31 = arith.constant dense<0xFF800000> : vector<2x8xf32>
    %100 = vector.multi_reduction <maximumf>, %99, %cst_31 [2] : vector<2x8x8xf32> to vector<2x8xf32>
    %101 = vector.shape_cast %100 : vector<2x8xf32> to vector<2x8x1xf32>
    %102 = vector.broadcast %101 : vector<2x8x1xf32> to vector<2x8x8xf32>
    %103 = arith.subf %99, %102 : vector<2x8x8xf32>
    %104 = math.exp %103 : vector<2x8x8xf32>
    %cst_32 = arith.constant dense<0.000000e+00> : vector<2x8xf32>
    %105 = vector.multi_reduction <add>, %104, %cst_32 [2] : vector<2x8x8xf32> to vector<2x8xf32>
    %106 = vector.shape_cast %105 : vector<2x8xf32> to vector<2x8x1xf32>
    %107 = tpu.reciprocal %106 {approx = true} : vector<2x8x1xf32> -> vector<2x8x1xf32>
    %108 = vector.broadcast %107 : vector<2x8x1xf32> to vector<2x8x8xf32>
    %109 = arith.mulf %104, %108 : vector<2x8x8xf32>
    "tpu.trace_start"() <{level = 10 : i32, message = "bqk,bkd->bqd"}> : () -> ()
    %cst_33 = arith.constant dense<0.000000e+00> : vector<2x8x8xf32>
    %110 = tpu.matmul %109, %96, %cst_33 {dimension_numbers = #tpu.dot_dimension_numbers<[2], [1], [1], [2], [0, 0, 0, 1, 1, 2], [0], [0]>} : vector<2x8x8xf32>, vector<2x8x8xf32>, vector<2x8x8xf32> -> vector<2x8x8xf32>
    "tpu.trace_stop"() : () -> ()
    %111 = vector.shape_cast %110 : vector<2x8x8xf32> to vector<16x8xf32>
    %c0_34 = arith.constant 0 : index
    %c24 = arith.constant 24 : index
    %112 = vector.load %arg7[%c0_34, %c24] : memref<16x32xf32, #tpu.memory_space<vmem>>, vector<16x8xf32>
    tpu.vector_store %arg7[%c0_34, %c24], %111 {strides = array<i32>} : memref<16x32xf32, #tpu.memory_space<vmem>>, vector<16x8xf32>,
    %c0_35 = arith.constant 0 : index
    %c0_36 = arith.constant 0 : index
    %113 = vector.load %arg7[%c0_35, %c0_36] : memref<16x32xf32, #tpu.memory_space<vmem>>, vector<16x32xf32>
    %c0_37 = arith.constant 0 : index
    %c0_38 = arith.constant 0 : index
    %114 = vector.load %arg2[%c0_37, %c0_38] : memref<32x32xf32, #tpu.memory_space<vmem>>, vector<32x32xf32>
    %cst_39 = arith.constant dense<0.000000e+00> : vector<16x32xf32>
    %115 = tpu.matmul %113, %114, %cst_39 {dimension_numbers = #tpu.dot_dimension_numbers<[1], [0], [0], [1], [0, 0, 1, 1], [], []>} : vector<16x32xf32>, vector<32x32xf32>, vector<16x32xf32> -> vector<16x32xf32>
    %116 = vector.broadcast %6 : vector<1x32xf32> to vector<16x32xf32>
    %117 = arith.addf %115, %116 : vector<16x32xf32>
    %118 = arith.addf %0, %117 : vector<16x32xf32>
    %cst_40 = arith.constant dense<0.000000e+00> : vector<16xf32>
    %119 = vector.multi_reduction <add>, %118, %cst_40 [1] : vector<16x32xf32> to vector<16xf32>
    %120 = vector.shape_cast %119 : vector<16xf32> to vector<16x1xf32>
    %cst_41 = arith.constant 3.200000e+01 : f32
    %121 = vector.broadcast %cst_41 : f32 to vector<16x1xf32>
    %122 = arith.divf %120, %121 : vector<16x1xf32>
    %123 = vector.broadcast %122 : vector<16x1xf32> to vector<16x32xf32>
    %124 = arith.subf %118, %123 : vector<16x32xf32>
    %125 = arith.mulf %124, %124 : vector<16x32xf32>
    %cst_42 = arith.constant dense<0.000000e+00> : vector<16xf32>
    %126 = vector.multi_reduction <add>, %125, %cst_42 [1] : vector<16x32xf32> to vector<16xf32>
    %127 = vector.shape_cast %126 : vector<16xf32> to vector<16x1xf32>
    %cst_43 = arith.constant 3.200000e+01 : f32
    %128 = vector.broadcast %cst_43 : f32 to vector<16x1xf32>
    %129 = arith.divf %127, %128 : vector<16x1xf32>
    %130 = vector.broadcast %122 : vector<16x1xf32> to vector<16x32xf32>
    %131 = arith.subf %118, %130 : vector<16x32xf32>
    %cst_44 = arith.constant 9.99999974E-6 : f32
    %132 = vector.broadcast %cst_44 : f32 to vector<16x1xf32>
    %133 = arith.addf %129, %132 : vector<16x1xf32>
    %134 = math.rsqrt %133 : vector<16x1xf32>
    %135 = vector.broadcast %134 : vector<16x1xf32> to vector<16x32xf32>
    %136 = arith.mulf %131, %135 : vector<16x32xf32>
    %137 = vector.broadcast %4 : vector<1x32xf32> to vector<16x32xf32>
    %138 = arith.mulf %136, %137 : vector<16x32xf32>
    %139 = vector.broadcast %5 : vector<1x32xf32> to vector<16x32xf32>
    %140 = arith.addf %138, %139 : vector<16x32xf32>
    %c0_45 = arith.constant 0 : index
    %c0_46 = arith.constant 0 : index
    %141 = vector.load %arg3[%c0_45, %c0_46] : memref<32x128xf32, #tpu.memory_space<vmem>>, vector<32x128xf32>
    %cst_47 = arith.constant dense<0.000000e+00> : vector<16x128xf32>
    %142 = tpu.matmul %140, %141, %cst_47 {dimension_numbers = #tpu.dot_dimension_numbers<[1], [0], [0], [1], [0, 0, 1, 1], [], []>} : vector<16x32xf32>, vector<32x128xf32>, vector<16x128xf32> -> vector<16x128xf32>
    %143 = vector.broadcast %8 : vector<1x128xf32> to vector<16x128xf32>
    %144 = arith.addf %142, %143 : vector<16x128xf32>
    %cst_48 = arith.constant 0.000000e+00 : f32
    %145 = vector.broadcast %cst_48 : f32 to vector<16x128xf32>
    %146 = arith.maximumf %144, %145 : vector<16x128xf32>
    %c0_49 = arith.constant 0 : index
    %c0_50 = arith.constant 0 : index
    %147 = vector.load %arg4[%c0_49, %c0_50] : memref<128x32xf32, #tpu.memory_space<vmem>>, vector<128x32xf32>
    %cst_51 = arith.constant dense<0.000000e+00> : vector<16x32xf32>
    %148 = tpu.matmul %146, %147, %cst_51 {dimension_numbers = #tpu.dot_dimension_numbers<[1], [0], [0], [1], [0, 0, 1, 1], [], []>} : vector<16x128xf32>, vector<128x32xf32>, vector<16x32xf32> -> vector<16x32xf32>
    %149 = vector.broadcast %7 : vector<1x32xf32> to vector<16x32xf32>
    %150 = arith.addf %148, %149 : vector<16x32xf32>
    %151 = arith.addf %118, %150 : vector<16x32xf32>
    %c0_52 = arith.constant 0 : index
    %c0_53 = arith.constant 0 : index
    %152 = vector.load %arg6[%c0_52, %c0_53] : memref<16x32xf32, #tpu.memory_space<vmem>>, vector<16x32xf32>
    tpu.vector_store %arg6[%c0_52, %c0_53], %151 {strides = array<i32>} : memref<16x32xf32, #tpu.memory_space<vmem>>, vector<16x32xf32>,
    return
  }
}

</mosaic_0001>

<bundles_post_ra>
// kernel: encoder_forward.1
= control target key start
LH: loop header
LB: loop body
LE: loop exit
PB: predicated region body
PF: predicated region fallthrough
CT: control target
= control target key end

     0   :  { %vm27_vm0 = vcmask 261120   ;;  %s2594_s0 = inlined_call_operand.vmem [shape: f32[16,32], index: 0, kind: input, shape index: {}]   ;;  %s2595_s1 = inlined_call_operand.vmem [shape: f32[32,96], index: 1, kind: input, shape index: {}]   ;;  %s2596_s2 = inlined_call_operand.vmem [shape: f32[32,32], index: 2, kind: input, shape index: {}]   ;;  %s2597_s3 = inlined_call_operand.vmem [shape: f32[32,128], index: 3, kind: input, shape index: {}]   ;;  %s2598_s4 = inlined_call_operand.vmem [shape: f32[128,32], index: 4, kind: input, shape index: {}]   ;;  %s2599_s5 = inlined_call_operand.vmem [shape: f32[8,128], index: 5, kind: input, shape index: {}]   ;;  %s2600_s6 = inlined_call_operand.hbm [shape: f32[16,32], index: 6, kind: output, shape index: {}]  }
   0x1   :  { %v2295_v0 = vld [vmem:[%s2594_s0] sm:$0xff]  ;;  %v2300_v1 = vld [vmem:[%s2594_s0 + $0x8] sm:$0xff] }
   0x2   :  { %11 = vsyncpa [#allocation4], 0  ;;  %v28_v2 = vsel %vm27_vm0, %v2295_v0, 0.0  ;;  %v31_v3 = vsel %vm27_vm0, %v2300_v1, 0.0  ;;  %v67_v14 = vld [vmem:[%s2595_s1] sm:$0xff]  ;;  %v68_v15 = vld [vmem:[%s2595_s1 + $0x8] sm:$0xff]  ;;  %v55_v22 = vlaneseq }
   0x3   :  { %29 = vadd.xlane.f32.xlu0 %v28_v2  ;;  %v69_v16 = vld [vmem:[%s2595_s1 + $0x10] sm:$0xff]  ;;  %v2101_v17 = vpack.c.bf16 %v68_v15, %v67_v14  ;;  %v70_v18 = vld [vmem:[%s2595_s1 + $0x18] sm:$0xff]  ;;  %v2328_v29 = vld [vmem:[%s2599_s5] sm:$0xff]  ;;  %v2239_v41 = vmov 0.0   ;;  %vm2240_vm1 = vmmov 0   ;;  %s2241_s5 = smov 96  }
   0x4   :  { %v2105_v19 = vpack.c.bf16 %v70_v18, %v69_v16  ;;  %v2322_v26 = vshrl.u32 %v55_v22, 7  ;;  %1974 = vmatprep.subr.mxu0 %v2239_v41  ;;  %1976 = vmatprep.mubr.msk.f32.mxu0 %vm2240_vm1, %v2239_v41  ;;  %vm159_vm2 = vcmask 64512   ;;  %s2242_s9 = smov 64   ;;  %s2243_s10 = smov 88   ;;  %vm829_vm3 = vcmask 130112  }
   0x5   :  { %2102 = vmatprep.subr.bf16.mxu1 %v2101_v17  ;;  %s2244_s11 = smov 120   ;;  %s2245_s12 = smov 56   ;;  %vm1172_vm4 = vcmask 195712   ;;  %vm1515_vm5 = vcmask 261312  }
   0x6   :  { %2104 = vmatpush3.bf16.msra.mxu1 %v2101_v17  ;;  %v57_v28 = vsub.s32 0, %v2322_v26  ;;  %v63_v30 = vsub.s32 1, %v2322_v26  ;;  %v73_v42 = vsub.s32 7, %v2322_v26  ;;  %s2246_s13 = smov 80   ;;  %s2247_s14 = smov 112  }
   0x7   :  { %32 = vadd.xlane.f32.xlu0 %v31_v3  ;;  %2106 = vmatprep.subr.bf16.mxu1 %v2105_v19  ;;  %s2248_s15 = smov 48   ;;  %s2249_s16 = smov 72  }
   0x8   :  { %v58_v31 = vrot.slane %v2328_v29, %v57_v28  ;;  %v64_v34 = vrot.slane %v2328_v29, %v63_v30  ;;  %v74_v43 = vrot.slane %v2328_v29, %v73_v42  ;;  %s2250_s17 = smov 104   ;;  %s2251_s18 = smov 40  }
   0x9   :  { %s2252_s19 = smov 8   ;;  %s2253_s20 = smov 16  }
   0xa   :  { %2108 = vmatpush3.bf16.msra.mxu1 %v2105_v19  ;;  %s2254_s28 = smov 24  }
   0xb   :  { %1964 = vmatprep.subr.mxu1 %v2239_v41 }
  0x90   :  { %v30_v4 = vpop.xlane.xlu0 %29 }
  0x91   :  { %v35_v5 = vmul.f32 0.03125, %v30_v4 }
  0x93   :  { %v37_v6 = vsub.f32 %v2295_v0, %v35_v5 }
  0x94   :  { %v33_v7 = vpop.xlane.xlu0 %32 }
  0x95   :  { %v36_v8 = vmul.f32 0.03125, %v33_v7  ;;  %v39_v9 = vmul.f32 %v37_v6, %v37_v6 }
  0x97   :  { %v38_v10 = vsub.f32 %v2300_v1, %v36_v8  ;;  %v41_v11 = vsel %vm27_vm0, %v39_v9, 0.0 }
  0x98   :  { %42 = vadd.xlane.f32.xlu1 %v41_v11 }
  0x99   :  { %v40_v12 = vmul.f32 %v38_v10, %v38_v10 }
  0x9b   :  { %v44_v13 = vsel %vm27_vm0, %v40_v12, 0.0 }
  0x9c   :  { %45 = vadd.xlane.f32.xlu1 %v44_v13 }
 0x125   :  { %v43_v20 = vpop.xlane.xlu1 %42 }
 0x126   :  { %v47_v21 = vmul.f32 0.03125, %v43_v20 }
 0x128   :  { %v49_v23 = vadd.f32 1e-05, %v47_v21 }
 0x129   :  { %v46_v24 = vpop.xlane.xlu1 %45 }
 0x12a   :  { %2175 = vrsqrt.f32 %v49_v23  ;;  %v48_v25 = vmul.f32 0.03125, %v46_v24 }
 0x12c   :  { %v50_v27 = vadd.f32 1e-05, %v48_v25 }
 0x12e   :  { %2177 = vrsqrt.f32 %v50_v27 }
 0x134   :  { %v2176_v32 = vpop.eup %2175 }
 0x135   :  { %v53_v33 = vmul.f32 %v2176_v32, %v37_v6 }
 0x137   :  { %v59_v35 = vmul.f32 %v58_v31, %v53_v33 }
 0x138   :  { %v2178_v36 = vpop.eup %2177 }
 0x139   :  { %v54_v37 = vmul.f32 %v2178_v36, %v38_v10  ;;  %v65_v38 = vadd.f32 %v64_v34, %v59_v35 }
 0x13b   :  { %v60_v39 = vmul.f32 %v58_v31, %v54_v37  ;;  %1961 = vmatprep.mubr.msk.f32.mxu1 %vm27_vm0, %v65_v38 }
 0x13d   :  { %v66_v40 = vadd.f32 %v64_v34, %v60_v39 }
 0x13f   :  { %1962 = vmatmul.mubr.msk.f32.vlgmr.msra.gmra.mrb[0].mxu1 %vm27_vm0, %v66_v40 }
 0x140   :  { %1966 = vmatprep.mubr.msk.f32.mxu1 %vm2240_vm1, %v2239_v41 }
 0x212   :  { %v1963_v44 = vpop.f32.mrb[0].mxu1 }
 0x213   :  { %v2343_v45 = vadd.f32 %v1963_v44, %v74_v43  ;;  %v147_v46 = vpop.f32.mrb[1].mxu1 }
 0x214   :  { %v2345_v47 = vadd.f32 %v147_v46, %v74_v43 }
 0x215   :  { %235 = vrot.lane.b32.xlu1 %v2343_v45, %s2241_s5 }
 0x216   :  { %157 = vrot.lane.b32.xlu0 %v2345_v47, %s2241_s5 }
 0x287   :  { %v236_v49 = vpop.permute.xlu1 %235 }
 0x288   :  { %v158_v48 = vpop.permute.xlu0 %157 }
 0x289   :  { %1965 = vmatpush3.xpose.msk.msra.mxu1 %vm159_vm2, %v158_v48 }
 0x28a   :  { %1969 = vmatprep.subr.mxu1 %v2239_v41 }
 0x28c   :  { %1967 = vmatmul.mubr.msk.f32.vlgmr.msra.gmra.mrb[2].mxu1 %vm159_vm2, %v2345_v47 }
 0x28d   :  { %1970 = vmatpush3.xpose.msk.msra.mxu1 %vm159_vm2, %v236_v49  ;;  %1971 = vmatprep.mubr.msk.f32.mxu1 %vm2240_vm1, %v2239_v41 }
 0x28e   :  { %1979 = vmatprep.subr.mxu1 %v2239_v41 }
 0x290   :  { %1972 = vmatmul.mubr.msk.f32.vlgmr.msra.gmra.mrb[4].mxu1 %vm159_vm2, %v2343_v45 }
 0x291   :  { %1981 = vmatprep.mubr.msk.f32.mxu1 %vm2240_vm1, %v2239_v41 }
 0x35f   :  { %v230_v50 = vpop.f32.mrb[2].mxu1 }
 0x360   :  { %v311_v51 = vmul.f32 0.17677669, %v230_v50  ;;  %v1968_v52 = vpop.f32.mrb[3].mxu1 }
 0x362   :  { %v313_v53 = vsel %vm159_vm2, %v311_v51, -inf }
 0x363   :  { %314 = vmax.xlane.f32.xlu1 %v313_v53  ;;  %v307_v54 = vpop.f32.mrb[4].mxu1 }
 0x364   :  { %v312_v55 = vmul.f32 0.17677669, %v307_v54  ;;  %v1973_v56 = vpop.f32.mrb[5].mxu1 }
 0x366   :  { %v316_v57 = vsel %vm159_vm2, %v312_v55, -inf }
 0x367   :  { %317 = vmax.xlane.f32.xlu0 %v316_v57 }
 0x374   :  { %411 = vrot.lane.b32.xlu1 %v2343_v45, %s2242_s9 }
 0x378   :  { %491 = vrot.lane.b32.xlu1 %v2345_v47, %s2243_s10 }
 0x37c   :  { %569 = vrot.lane.b32.xlu1 %v2343_v45, %s2243_s10 }
 0x37d   :  { %335 = vrot.lane.b32.xlu0 %v2345_v47, %s2242_s9 }
 0x3f0   :  { %v315_v58 = vpop.xlane.xlu1 %314 }
 0x3f1   :  { %v319_v59 = vsub.f32 %v311_v51, %v315_v58 }
 0x3f3   :  { %v321_v60 = vmul.f32 1.442695, %v319_v59 }
 0x3f4   :  { %v412_v61 = vpop.permute.xlu1 %411  ;;  %v318_v62 = vpop.xlane.xlu0 %317 }
 0x3f5   :  { %2179 = vpow2.f32 %v321_v60  ;;  %v320_v63 = vsub.f32 %v312_v55, %v318_v62  ;;  %1980 = vmatpush3.msra.mxu1 %v412_v61 }
 0x3f6   :  { %1989 = vmatprep.subr.mxu1 %v2239_v41 }
 0x3f7   :  { %v323_v2 = vmul.f32 1.442695, %v320_v63 }
 0x3f8   :  { %v336_v3 = vpop.permute.xlu0 %335  ;;  %v492_v8 = vpop.permute.xlu1 %491 }
 0x3f9   :  { %2181 = vpow2.f32 %v323_v2  ;;  %1975 = vmatpush3.msra.mxu0 %v336_v3 }
 0x3fa   :  { %1984 = vmatprep.subr.mxu0 %v2239_v41 }
 0x3fc   :  { %v570_v9 = vpop.permute.xlu1 %569 }
 0x3ff   :  { %v2180_v4 = vpop.eup %2179 }
 0x400   :  { %v325_v5 = vsel %vm159_vm2, %v2180_v4, 0.0 }
 0x401   :  { %326 = vadd.xlane.f32.xlu0 %v325_v5 }
 0x403   :  { %v2182_v6 = vpop.eup %2181 }
 0x404   :  { %v328_v7 = vsel %vm159_vm2, %v2182_v6, 0.0 }
 0x405   :  { %329 = vadd.xlane.f32.xlu1 %v328_v7 }
 0x416   :  { %567 = vrot.lane.b32.xlu1 %v2343_v45, %s2244_s11 }
 0x417   :  { %489 = vrot.lane.b32.xlu0 %v2345_v47, %s2244_s11 }
 0x48e   :  { %v327_v10 = vpop.xlane.xlu0 %326 }
 0x48f   :  { %2183 = vrcp.f32 %v327_v10 }
 0x492   :  { %v330_v11 = vpop.xlane.xlu1 %329  ;;  %v490_v16 = vpop.permute.xlu0 %489 }
 0x493   :  { %2185 = vrcp.f32 %v330_v11 }
 0x496   :  { %v568_v17 = vpop.permute.xlu1 %567 }
 0x499   :  { %v2184_v12 = vpop.eup %2183 }
 0x49a   :  { %v333_v13 = vmul.f32 %v2184_v12, %v2180_v4 }
 0x49c   :  { %1977 = vmatmul.mubr.msk.f32.vlgmr.msra.gmra.mrb[0].mxu0 %vm159_vm2, %v333_v13 }
 0x49d   :  { %v2186_v14 = vpop.eup %2185  ;;  %1985 = vmatpush3.xpose.msk.msra.mxu0 %vm159_vm2, %v492_v8  ;;  %1986 = vmatprep.mubr.msk.f32.mxu0 %vm2240_vm1, %v2239_v41 }
 0x49e   :  { %v334_v15 = vmul.f32 %v2186_v14, %v2182_v6  ;;  %1994 = vmatprep.subr.mxu0 %v2239_v41 }
 0x4a0   :  { %1982 = vmatmul.mubr.msk.f32.vlgmr.msra.gmra.mrb[6].mxu1 %vm159_vm2, %v334_v15  ;;  %1987 = vmatmul.mubr.msk.f32.vlgmr.msra.gmra.mrb[2].mxu0 %vm159_vm2, %v490_v16 }
 0x4a1   :  { %1990 = vmatpush3.xpose.msk.msra.mxu1 %vm159_vm2, %v570_v9  ;;  %1991 = vmatprep.mubr.msk.f32.mxu1 %vm2240_vm1, %v2239_v41 }
 0x4a2   :  { %1999 = vmatprep.subr.mxu1 %v2239_v41  ;;  %1996 = vmatprep.mubr.msk.f32.mxu0 %vm2240_vm1, %v2239_v41 }
 0x4a4   :  { %1992 = vmatmul.mubr.msk.f32.vlgmr.msra.gmra.mrb[8].mxu1 %vm159_vm2, %v568_v17 }
 0x4a5   :  { %2001 = vmatprep.mubr.msk.f32.mxu1 %vm2240_vm1, %v2239_v41 }
 0x56f   :  { %v407_v18 = vpop.f32.mrb[0].mxu0 }
 0x570   :  { %487 = vst.msk [vmem:[#allocation2] sm:$0xff] %vm159_vm2, %v407_v18  ;;  %v1978_v19 = vpop.f32.mrb[1].mxu0 }
 0x573   :  { %v483_v20 = vpop.f32.mrb[6].mxu1  ;;  %v563_v21 = vpop.f32.mrb[2].mxu0 }
 0x574   :  { %488 = vst.msk [vmem:[#allocation2 + $0x8] sm:$0xff] %vm159_vm2, %v483_v20  ;;  %v645_v22 = vmul.f32 0.17677669, %v563_v21  ;;  %v1983_v23 = vpop.f32.mrb[7].mxu1  ;;  %v1988_v24 = vpop.f32.mrb[3].mxu0 }
 0x576   :  { %v647_v25 = vsel %vm159_vm2, %v645_v22, -inf }
 0x577   :  { %648 = vmax.xlane.f32.xlu0 %v647_v25  ;;  %v641_v27 = vpop.f32.mrb[8].mxu1 }
 0x578   :  { %v646_v28 = vmul.f32 0.17677669, %v641_v27  ;;  %v1993_v30 = vpop.f32.mrb[9].mxu1 }
 0x57a   :  { %v650_v31 = vsel %vm159_vm2, %v646_v28, -inf }
 0x57b   :  { %651 = vmax.xlane.f32.xlu1 %v650_v31 }
 0x58c   :  { %745 = vrot.lane.b32.xlu1 %v2343_v45, %s2245_s12 }
 0x58d   :  { %669 = vrot.lane.b32.xlu0 %v2345_v47, %s2245_s12 }
 0x590   :  { %834 = vrot.lane.b32.xlu1 %v2345_v47, %s2246_s13 }
 0x594   :  { %912 = vrot.lane.b32.xlu1 %v2343_v45, %s2246_s13 }
 0x598   :  { %910 = vrot.lane.b32.xlu1 %v2343_v45, %s2247_s14 }
 0x604   :  { %v649_v32 = vpop.xlane.xlu0 %648 }
 0x605   :  { %v653_v33 = vsub.f32 %v645_v22, %v649_v32 }
 0x607   :  { %v655_v34 = vmul.f32 1.442695, %v653_v33 }
 0x608   :  { %v670_v35 = vpop.permute.xlu0 %669  ;;  %v652_v36 = vpop.xlane.xlu1 %651 }
 0x609   :  { %2187 = vpow2.f32 %v655_v34  ;;  %v654_v37 = vsub.f32 %v646_v28, %v652_v36  ;;  %1995 = vmatpush3.msra.mxu0 %v670_v35 }
 0x60a   :  { %2004 = vmatprep.subr.mxu0 %v2239_v41 }
 0x60b   :  { %v657_v38 = vmul.f32 1.442695, %v654_v37 }
 0x60c   :  { %v746_v39 = vpop.permute.xlu1 %745 }
 0x60d   :  { %2189 = vpow2.f32 %v657_v38  ;;  %2000 = vmatpush3.msra.mxu1 %v746_v39 }
 0x60e   :  { %2009 = vmatprep.subr.mxu1 %v2239_v41 }
 0x610   :  { %v835_v49 = vpop.permute.xlu1 %834 }
 0x613   :  { %v2188_v40 = vpop.eup %2187 }
 0x614   :  { %v659_v42 = vsel %vm159_vm2, %v2188_v40, 0.0  ;;  %v913_v53 = vpop.permute.xlu1 %912 }
 0x615   :  { %660 = vadd.xlane.f32.xlu0 %v659_v42 }
 0x617   :  { %v2190_v43 = vpop.eup %2189 }
 0x618   :  { %v662_v44 = vsel %vm159_vm2, %v2190_v43, 0.0  ;;  %v911_v56 = vpop.permute.xlu1 %910 }
 0x619   :  { %663 = vadd.xlane.f32.xlu0 %v662_v44 }
 0x62f   :  { %832 = vrot.lane.b32.xlu0 %v2345_v47, %s2247_s14 }
 0x6a2   :  { %v661_v46 = vpop.xlane.xlu0 %660 }
 0x6a3   :  { %2191 = vrcp.f32 %v661_v46 }
 0x6a6   :  { %v664_v48 = vpop.xlane.xlu0 %663 }
 0x6a7   :  { %2193 = vrcp.f32 %v664_v48 }
 0x6aa   :  { %v833_v55 = vpop.permute.xlu0 %832 }
 0x6ad   :  { %v2192_v50 = vpop.eup %2191 }
 0x6ae   :  { %v667_v51 = vmul.f32 %v2192_v50, %v2188_v40 }
 0x6b0   :  { %1997 = vmatmul.mubr.msk.f32.vlgmr.msra.gmra.mrb[4].mxu0 %vm159_vm2, %v667_v51 }
 0x6b1   :  { %v2194_v52 = vpop.eup %2193  ;;  %2005 = vmatpush3.xpose.msk.msra.mxu0 %vm159_vm2, %v835_v49  ;;  %2006 = vmatprep.mubr.msk.f32.mxu0 %vm2240_vm1, %v2239_v41 }
 0x6b2   :  { %v668_v54 = vmul.f32 %v2194_v52, %v2190_v43  ;;  %2014 = vmatprep.subr.mxu0 %v2239_v41 }
 0x6b4   :  { %2002 = vmatmul.mubr.msk.f32.vlgmr.msra.gmra.mrb[10].mxu1 %vm159_vm2, %v668_v54  ;;  %2007 = vmatmul.mubr.msk.f32.vlgmr.msra.gmra.mrb[6].mxu0 %vm159_vm2, %v833_v55 }
 0x6b5   :  { %2010 = vmatpush3.xpose.msk.msra.mxu1 %vm159_vm2, %v913_v53  ;;  %2011 = vmatprep.mubr.msk.f32.mxu1 %vm2240_vm1, %v2239_v41 }
 0x6b6   :  { %2019 = vmatprep.subr.mxu1 %v2239_v41  ;;  %2016 = vmatprep.mubr.msk.f32.mxu0 %vm2240_vm1, %v2239_v41 }
 0x6b8   :  { %2012 = vmatmul.mubr.msk.f32.vlgmr.msra.gmra.mrb[12].mxu1 %vm159_vm2, %v911_v56 }
 0x6b9   :  { %2021 = vmatprep.mubr.msk.f32.mxu1 %vm2240_vm1, %v2239_v41 }
 0x783   :  { %v2419_v57 = vpop.f32.mrb[4].mxu0 }
 0x784   :  { %v1998_v58 = vpop.f32.mrb[5].mxu0 }
 0x787   :  { %v2421_v59 = vpop.f32.mrb[10].mxu1  ;;  %v906_v60 = vpop.f32.mrb[6].mxu0 }
 0x788   :  { %v988_v61 = vmul.f32 0.17677669, %v906_v60  ;;  %v2003_v62 = vpop.f32.mrb[11].mxu1  ;;  %v2008_v63 = vpop.f32.mrb[7].mxu0 }
 0x78a   :  { %v990_v2 = vsel %vm159_vm2, %v988_v61, -inf }
 0x78b   :  { %991 = vmax.xlane.f32.xlu0 %v990_v2  ;;  %v984_v3 = vpop.f32.mrb[12].mxu1 }
 0x78c   :  { %v989_v4 = vmul.f32 0.17677669, %v984_v3  ;;  %v2013_v5 = vpop.f32.mrb[13].mxu1 }
 0x78e   :  { %v993_v6 = vsel %vm159_vm2, %v989_v4, -inf }
 0x78f   :  { %994 = vmax.xlane.f32.xlu1 %v993_v6  ;;  %v1522_v6 = vld [vmem:[%s2596_s2 + $0x10] sm:$0xff] }
 0x7a0   :  { %1088 = vrot.lane.b32.xlu1 %v2343_v45, %s2248_s15 }
 0x7a1   :  { %1012 = vrot.lane.b32.xlu0 %v2345_v47, %s2248_s15 }
 0x7a4   :  { %1177 = vrot.lane.b32.xlu1 %v2345_v47, %s2249_s16 }
 0x7a8   :  { %1255 = vrot.lane.b32.xlu1 %v2343_v45, %s2249_s16 }
 0x7ac   :  { %1253 = vrot.lane.b32.xlu1 %v2343_v45, %s2250_s17 }
 0x818   :  { %v992_v7 = vpop.xlane.xlu0 %991 }
 0x819   :  { %v996_v8 = vsub.f32 %v988_v61, %v992_v7  ;;  %v1523_v7 = vld [vmem:[%s2596_s2 + $0x18] sm:$0xff] }
 0x81b   :  { %v998_v9 = vmul.f32 1.442695, %v996_v8  ;;  %v2113_v8 = vpack.c.bf16 %v1523_v7, %v1522_v6 }
 0x81c   :  { %v1013_v10 = vpop.permute.xlu0 %1012  ;;  %v995_v11 = vpop.xlane.xlu1 %994 }
 0x81d   :  { %2195 = vpow2.f32 %v998_v9  ;;  %v997_v12 = vsub.f32 %v989_v4, %v995_v11  ;;  %2015 = vmatpush3.msra.mxu0 %v1013_v10  ;;  %v1521_v4 = vld [vmem:[%s2596_s2 + $0x8] sm:$0xff] }
 0x81e   :  { %2024 = vmatprep.subr.mxu0 %v2239_v41 }
 0x81f   :  { %v1000_v13 = vmul.f32 1.442695, %v997_v12 }
 0x820   :  { %v1089_v14 = vpop.permute.xlu1 %1088 }
 0x821   :  { %2197 = vpow2.f32 %v1000_v13  ;;  %2020 = vmatpush3.msra.mxu1 %v1089_v14 }
 0x822   :  { %2029 = vmatprep.subr.mxu1 %v2239_v41 }
 0x824   :  { %v1178_v21 = vpop.permute.xlu1 %1177 }
 0x827   :  { %v2196_v15 = vpop.eup %2195 }
 0x828   :  { %v1002_v16 = vsel %vm159_vm2, %v2196_v15, 0.0  ;;  %v1256_v25 = vpop.permute.xlu1 %1255 }
 0x829   :  { %1003 = vadd.xlane.f32.xlu0 %v1002_v16 }
 0x82b   :  { %v2198_v17 = vpop.eup %2197 }
 0x82c   :  { %v1005_v18 = vsel %vm159_vm2, %v2198_v17, 0.0  ;;  %v1254_v30 = vpop.permute.xlu1 %1253 }
 0x82d   :  { %1006 = vadd.xlane.f32.xlu0 %v1005_v18 }
 0x843   :  { %1175 = vrot.lane.b32.xlu0 %v2345_v47, %s2250_s17 }
 0x8b6   :  { %v1004_v19 = vpop.xlane.xlu0 %1003 }
 0x8b7   :  { %2199 = vrcp.f32 %v1004_v19 }
 0x8ba   :  { %v1007_v20 = vpop.xlane.xlu0 %1006 }
 0x8bb   :  { %2201 = vrcp.f32 %v1007_v20 }
 0x8be   :  { %v1176_v28 = vpop.permute.xlu0 %1175 }
 0x8c1   :  { %v2200_v22 = vpop.eup %2199 }
 0x8c2   :  { %v1010_v23 = vmul.f32 %v2200_v22, %v2196_v15 }
 0x8c4   :  { %2017 = vmatmul.mubr.msk.f32.vlgmr.msra.gmra.mrb[8].mxu0 %vm159_vm2, %v1010_v23 }
 0x8c5   :  { %v2202_v24 = vpop.eup %2201  ;;  %2025 = vmatpush3.xpose.msk.msra.mxu0 %vm159_vm2, %v1178_v21  ;;  %2026 = vmatprep.mubr.msk.f32.mxu0 %vm2240_vm1, %v2239_v41 }
 0x8c6   :  { %v1011_v27 = vmul.f32 %v2202_v24, %v2198_v17  ;;  %2034 = vmatprep.subr.mxu0 %v2239_v41  ;;  %v1526_v17 = vsub.s32 4, %v2322_v26 }
 0x8c8   :  { %2022 = vmatmul.mubr.msk.f32.vlgmr.msra.gmra.mrb[14].mxu1 %vm159_vm2, %v1011_v27  ;;  %2027 = vmatmul.mubr.msk.f32.vlgmr.msra.gmra.mrb[10].mxu0 %vm159_vm2, %v1176_v28  ;;  %v1527_v18 = vrot.slane %v2328_v29, %v1526_v17 }
 0x8c9   :  { %2030 = vmatpush3.xpose.msk.msra.mxu1 %vm159_vm2, %v1256_v25  ;;  %2031 = vmatprep.mubr.msk.f32.mxu1 %vm2240_vm1, %v2239_v41 }
 0x8ca   :  { %2039 = vmatprep.subr.mxu1 %v2239_v41  ;;  %2036 = vmatprep.mubr.msk.f32.mxu0 %vm2240_vm1, %v2239_v41 }
 0x8cc   :  { %2032 = vmatmul.mubr.msk.f32.vlgmr.msra.gmra.mrb[16].mxu1 %vm159_vm2, %v1254_v30 }
 0x8cd   :  { %2041 = vmatprep.mubr.msk.f32.mxu1 %vm2240_vm1, %v2239_v41 }
 0x997   :  { %v1084_v31 = vpop.f32.mrb[8].mxu0 }
 0x998   :  { %v2018_v32 = vpop.f32.mrb[9].mxu0 }
 0x99b   :  { %v1160_v33 = vpop.f32.mrb[14].mxu1  ;;  %v1249_v34 = vpop.f32.mrb[10].mxu0 }
 0x99c   :  { %v1331_v35 = vmul.f32 0.17677669, %v1249_v34  ;;  %v2023_v36 = vpop.f32.mrb[15].mxu1  ;;  %v2028_v37 = vpop.f32.mrb[11].mxu0 }
 0x99d   :  { %v1649_v37 = vld [vmem:[%s2597_s3] sm:$0xff] }
 0x99e   :  { %v1333_v38 = vsel %vm159_vm2, %v1331_v35, -inf }
 0x99f   :  { %1334 = vmax.xlane.f32.xlu0 %v1333_v38  ;;  %v1327_v39 = vpop.f32.mrb[16].mxu1  ;;  %v1650_v38 = vld [vmem:[%s2597_s3 + $0x8] sm:$0xff] }
 0x9a0   :  { %v1332_v40 = vmul.f32 0.17677669, %v1327_v39  ;;  %v2033_v42 = vpop.f32.mrb[17].mxu1  ;;  %v2117_v39 = vpack.c.bf16 %v1650_v38, %v1649_v37 }
 0x9a1   :  { %v1652_v42 = vld [vmem:[%s2597_s3 + $0x18] sm:$0xff] }
 0x9a2   :  { %v1336_v43 = vsel %vm159_vm2, %v1332_v40, -inf }
 0x9a3   :  { %1337 = vmax.xlane.f32.xlu1 %v1336_v43 }
 0x9b4   :  { %1431 = vrot.lane.b32.xlu1 %v2343_v45, %s2251_s18 }
 0x9b8   :  { %823 = vrot.lane.b32.xlu1 %v2419_v57, %s2252_s19 }
 0x9bc   :  { %825 = vrot.lane.b32.xlu1 %v2421_v59, %s2252_s19 }
 0x9c0   :  { %1168 = vrot.lane.b32.xlu1 %v1160_v33, %s2253_s20 }
 0xa2c   :  { %v1335_v41 = vpop.xlane.xlu0 %1334 }
 0xa2d   :  { %v1339_v44 = vsub.f32 %v1331_v35, %v1335_v41  ;;  %v1740_v41 = vld [vmem:[%s2598_s4] sm:$0xff] }
 0xa2f   :  { %v1341_v46 = vmul.f32 1.442695, %v1339_v44  ;;  %v1741_v44 = vld [vmem:[%s2598_s4 + $0x8] sm:$0xff] }
 0xa30   :  { %v1338_v48 = vpop.xlane.xlu1 %1337 }
 0xa31   :  { %2203 = vpow2.f32 %v1341_v46  ;;  %v1340_v49 = vsub.f32 %v1332_v40, %v1338_v48  ;;  %v1651_v40 = vld [vmem:[%s2597_s3 + $0x10] sm:$0xff]  ;;  %v2125_v48 = vpack.c.bf16 %v1741_v44, %v1740_v41 }
 0xa32   :  { %v2121_v43 = vpack.c.bf16 %v1652_v42, %v1651_v40  ;;  %v1742_v46 = vld [vmem:[%s2598_s4 + $0x10] sm:$0xff] }
 0xa33   :  { %v1343_v50 = vmul.f32 1.442695, %v1340_v49  ;;  %v1743_v49 = vld [vmem:[%s2598_s4 + $0x18] sm:$0xff] }
 0xa34   :  { %v1432_v51 = vpop.permute.xlu1 %1431 }
 0xa35   :  { %2205 = vpow2.f32 %v1343_v50  ;;  %2040 = vmatpush3.msra.mxu1 %v1432_v51  ;;  %v2129_v50 = vpack.c.bf16 %v1743_v49, %v1742_v46  ;;  %v1744_v51 = vld [vmem:[%s2598_s4 + $0x20] sm:$0xff] }
 0xa38   :  { %v824_v45 = vpop.permute.xlu1 %823 }
 0xa39   :  { %830 = vst.msk [vmem:[#allocation2] sm:$0xff] %vm829_vm3, %v824_v45  ;;  %v1745_v45 = vld [vmem:[%s2598_s4 + $0x28] sm:$0xff] }
 0xa3b   :  { %v2204_v52 = vpop.eup %2203 }
 0xa3c   :  { %v826_v53 = vpop.permute.xlu1 %825  ;;  %v1345_v54 = vsel %vm159_vm2, %v2204_v52, 0.0 }
 0xa3d   :  { %831 = vst.msk [vmem:[#allocation2 + $0x8] sm:$0xff] %vm829_vm3, %v826_v53  ;;  %1346 = vadd.xlane.f32.xlu0 %v1345_v54  ;;  %v1746_v53 = vld [vmem:[%s2598_s4 + $0x30] sm:$0xff]  ;;  %v1747_v54 = vld [vmem:[%s2598_s4 + $0x38] sm:$0xff] }
 0xa3f   :  { %v2206_v55 = vpop.eup %2205 }
 0xa40   :  { %v1169_v56 = vpop.permute.xlu1 %1168  ;;  %v1348_v57 = vsel %vm159_vm2, %v2206_v55, 0.0 }
 0xa41   :  { %1174 = vst.msk [vmem:[#allocation2 + $0x8] sm:$0xff] %vm1172_vm4, %v1169_v56  ;;  %1349 = vadd.xlane.f32.xlu0 %v1348_v57  ;;  %v1748_v56 = vld [vmem:[%s2598_s4 + $0x40] sm:$0xff]  ;;  %v1749_v57 = vld [vmem:[%s2598_s4 + $0x48] sm:$0xff] }
 0xa57   :  { %1355 = vrot.lane.b32.xlu0 %v2345_v47, %s2251_s18  ;;  %v1520_v47 = vld [vmem:[%s2596_s2] sm:$0xff] }
 0xa58   :  { %v2109_v5 = vpack.c.bf16 %v1521_v4, %v1520_v47 }
 0xa5a   :  { %2110 = vmatprep.subr.bf16.mxu1 %v2109_v5 }
 0xa5b   :  { %1166 = vrot.lane.b32.xlu0 %v1084_v31, %s2253_s20 }
 0xaca   :  { %v1347_v58 = vpop.xlane.xlu0 %1346 }
 0xacb   :  { %2207 = vrcp.f32 %v1347_v58  ;;  %v2141_v58 = vpack.c.bf16 %v1749_v57, %v1748_v56 }
 0xace   :  { %v1350_v59 = vpop.xlane.xlu0 %1349 }
 0xacf   :  { %2209 = vrcp.f32 %v1350_v59  ;;  %v1750_v59 = vld [vmem:[%s2598_s4 + $0x50] sm:$0xff] }
 0xad2   :  { %v1356_v60 = vpop.permute.xlu0 %1355 }
 0xad3   :  { %2035 = vmatpush3.msra.mxu0 %v1356_v60  ;;  %v1751_v60 = vld [vmem:[%s2598_s4 + $0x58] sm:$0xff] }
 0xad4   :  { %2126 = vmatprep.subr.bf16.mxu0 %v2125_v48 }
 0xad5   :  { %v2208_v61 = vpop.eup %2207 }
 0xad6   :  { %v1353_v62 = vmul.f32 %v2208_v61, %v2204_v52  ;;  %v1167_v63 = vpop.permute.xlu0 %1166  ;;  %v2133_v52 = vpack.c.bf16 %v1745_v45, %v1744_v51  ;;  %v2145_v61 = vpack.c.bf16 %v1751_v60, %v1750_v59 }
 0xad7   :  { %1173 = vst.msk [vmem:[#allocation2] sm:$0xff] %vm1172_vm4, %v1167_v63  ;;  %v1753_v63 = vld [vmem:[%s2598_s4 + $0x68] sm:$0xff] }
 0xad8   :  { %2037 = vmatmul.mubr.msk.f32.vlgmr.msra.gmra.mrb[12].mxu0 %vm159_vm2, %v1353_v62  ;;  %v1752_v62 = vld [vmem:[%s2598_s4 + $0x60] sm:$0xff] }
 0xad9   :  { %v2210_v2 = vpop.eup %2209  ;;  %2128 = vmatpush3.bf16.msra.mxu0 %v2125_v48 }
 0xada   :  { %v1354_v3 = vmul.f32 %v2210_v2, %v2206_v55  ;;  %2130 = vmatprep.subr.bf16.mxu0 %v2129_v50  ;;  %v2137_v55 = vpack.c.bf16 %v1747_v54, %v1746_v53  ;;  %v2149_v2 = vpack.c.bf16 %v1753_v63, %v1752_v62 }
 0xadc   :  { %2042 = vmatmul.mubr.msk.f32.vlgmr.msra.gmra.mrb[18].mxu1 %vm159_vm2, %v1354_v3 }
 0xadd   :  { %2112 = vmatpush3.bf16.msra.mxu1 %v2109_v5  ;;  %2132 = vmatpush3.bf16.msra.mxu0 %v2129_v50 }
 0xade   :  { %2114 = vmatprep.subr.bf16.mxu1 %v2113_v8  ;;  %2134 = vmatprep.subr.bf16.mxu0 %v2133_v52 }
 0xae1   :  { %2116 = vmatpush3.bf16.msra.mxu1 %v2113_v8  ;;  %2136 = vmatpush3.bf16.msra.mxu0 %v2133_v52  ;;  %v1639_v8 = vsub.s32 2, %v2322_v26 }
 0xae2   :  { %2118 = vmatprep.subr.bf16.mxu1 %v2117_v39  ;;  %2138 = vmatprep.subr.bf16.mxu0 %v2137_v55 }
 0xae5   :  { %2140 = vmatpush3.bf16.msra.mxu0 %v2137_v55 }
 0xae6   :  { %2142 = vmatprep.subr.bf16.mxu0 %v2141_v58 }
 0xae9   :  { %2144 = vmatpush3.bf16.msra.mxu0 %v2141_v58 }
 0xaea   :  { %2146 = vmatprep.subr.bf16.mxu0 %v2145_v61 }
 0xaed   :  { %2148 = vmatpush3.bf16.msra.mxu0 %v2145_v61 }
 0xaee   :  { %2150 = vmatprep.subr.bf16.mxu0 %v2149_v2 }
 0xaf1   :  { %2152 = vmatpush3.bf16.msra.mxu0 %v2149_v2 }
 0xbab   :  { %v1427_v9 = vpop.f32.mrb[12].mxu0 }
 0xbac   :  { %1509 = vrot.lane.b32.xlu0 %v1427_v9, %s2254_s28  ;;  %v2038_v10 = vpop.f32.mrb[13].mxu0  ;;  %v1645_v9 = vsub.s32 3, %v2322_v26 }
 0xbad   :  { %v1640_v10 = vrot.slane %v2328_v29, %v1639_v8 }
 0xbaf   :  { %v1503_v11 = vpop.f32.mrb[18].mxu1 }
 0xbb0   :  { %1511 = vrot.lane.b32.xlu1 %v1503_v11, %s2254_s28  ;;  %v2043_v12 = vpop.f32.mrb[19].mxu1 }
 0xc1e   :  { %v1510_v13 = vpop.permute.xlu0 %1509 }
 0xc1f   :  { %1516 = vst.msk [vmem:[#allocation2] sm:$0xff] %vm1515_vm5, %v1510_v13  ;;  %v1646_v13 = vrot.slane %v2328_v29, %v1645_v9 }
 0xc22   :  { %v1512_v14 = vpop.permute.xlu1 %1511 }
 0xc23   :  { %1517 = vst.msk [vmem:[#allocation2 + $0x8] sm:$0xff] %vm1515_vm5, %v1512_v14 }
 0xc26   :  { %v1518_v15 = vld [vmem:[#allocation2] sm:$0xff] }
 0xc27   :  { %2052 = vmatprep.mubr.msk.f32.mxu1 %vm27_vm0, %v1518_v15 }
 0xc2a   :  { %v1519_v16 = vld [vmem:[#allocation2 + $0x8] sm:$0xff] }
 0xc2b   :  { %2053 = vmatmul.mubr.msk.f32.vlgmr.msra.gmra.mrb[20].mxu1 %vm27_vm0, %v1519_v16 }
 0xc2c   :  { %2120 = vmatpush3.bf16.msra.mxu1 %v2117_v39 }
 0xc2d   :  { %2122 = vmatprep.subr.bf16.mxu1 %v2121_v43 }
 0xc30   :  { %2124 = vmatpush3.bf16.msra.mxu1 %v2121_v43 }
 0xcfe   :  { %v2054_v19 = vpop.f32.mrb[20].mxu1 }
 0xcff   :  { %v1606_v20 = vadd.f32 %v2054_v19, %v1527_v18  ;;  %v1600_v21 = vpop.f32.mrb[21].mxu1 }
 0xd00   :  { %v1601_v22 = vadd.f32 %v1600_v21, %v1527_v18  ;;  %v1755_v21 = vld [vmem:[%s2598_s4 + $0x78] sm:$0xff] }
 0xd01   :  { %v2484_v23 = vadd.f32 %v1606_v20, %v2300_v1  ;;  %v1754_v20 = vld [vmem:[%s2598_s4 + $0x70] sm:$0xff]  ;;  %s2255_s4 = smov [#allocation3]  }
 0xd02   :  { %v2487_v24 = vadd.f32 %v1601_v22, %v2295_v0  ;;  %v2153_v22 = vpack.c.bf16 %v1755_v21, %v1754_v20  ;;  %s1844_s14 = sshll.u32 %s2255_s4, 4  ;;  %s1845_s14 = int_to_ptr.vmem [resolvable:$true] %s1844_s14 }
 0xd03   :  { %v1614_v25 = vsel %vm27_vm0, %v2484_v23, 0.0  ;;  %s2215_s15 = scalar_lea.vmem %s1845_s14, 256  ;;  %p2220_p1 = scmp.lt.s32.totalorder %s1845_s14, %s1845_s14 }
 0xd04   :  { %1615 = vadd.xlane.f32.xlu1 %v1614_v25  ;;  %v1611_v27 = vsel %vm27_vm0, %v2487_v24, 0.0  ;;  %2154 = vmatprep.subr.bf16.mxu0 %v2153_v22  ;;  %v1655_v25 = vsub.s32 6, %v2322_v26  ;;  %p2216_p0 = scmp.ne.s32.totalorder %s1845_s14, %s2215_s15  ;;  %p2221_p2 = scmp.lt.s32.totalorder %s2215_s15, %s2215_s15 }
 0xd05   :  { %1612 = vadd.xlane.f32.xlu0 %v1611_v27  ;;  %2156 = vmatpush3.bf16.msra.mxu0 %v2153_v22 }
 0xd06   :  { %v1656_v27 = vrot.slane %v2328_v29, %v1655_v25  ;;  %p2222_p3 = por %p2221_p2, %p2220_p1 }
 0xd08   :  { %p2223_p4 = pnand %p2222_p3, %p2216_p0 }
 0xd91   :  { %v1616_v28 = vpop.xlane.xlu1 %1615 }
 0xd92   :  { %v1618_v30 = vmul.f32 0.03125, %v1616_v28  ;;  %v1613_v31 = vpop.xlane.xlu0 %1612 }
 0xd93   :  { %v1617_v32 = vmul.f32 0.03125, %v1613_v31 }
 0xd94   :  { %v2494_v33 = vsub.f32 %v2484_v23, %v1618_v30 }
 0xd95   :  { %v2497_v1 = vsub.f32 %v2487_v24, %v1617_v32 }
 0xd96   :  { %v1622_v35 = vmul.f32 %v2494_v33, %v2494_v33 }
 0xd97   :  { %v1621_v0 = vmul.f32 %v2497_v1, %v2497_v1 }
 0xd98   :  { %v1626_v36 = vsel %vm27_vm0, %v1622_v35, 0.0 }
 0xd99   :  { %v1623_v34 = vsel %vm27_vm0, %v1621_v0, 0.0  ;;  %v1758_v0 = vsub.s32 5, %v2322_v26 }
 0xd9a   :  { %1624 = vadd.xlane.f32.xlu0 %v1623_v34 }
 0xd9b   :  { %v1759_v34 = vrot.slane %v2328_v29, %v1758_v0 }
 0xd9e   :  { %1627 = vadd.xlane.f32.xlu0 %v1626_v36 }
 0xe27   :  { %v1625_v3 = vpop.xlane.xlu0 %1624 }
 0xe28   :  { %v1629_v47 = vmul.f32 0.03125, %v1625_v3 }
 0xe2a   :  { %v1631_v4 = vadd.f32 1e-05, %v1629_v47 }
 0xe2b   :  { %v1628_v5 = vpop.xlane.xlu0 %1627 }
 0xe2c   :  { %2211 = vrsqrt.f32 %v1631_v4  ;;  %v1630_v6 = vmul.f32 0.03125, %v1628_v5 }
 0xe2e   :  { %v1632_v7 = vadd.f32 1e-05, %v1630_v6 }
 0xe30   :  { %2213 = vrsqrt.f32 %v1632_v7 }
 0xe36   :  { %v2212_v11 = vpop.eup %2211 }
 0xe37   :  { %v1635_v12 = vmul.f32 %v2212_v11, %v2497_v1 }
 0xe39   :  { %v1641_v14 = vmul.f32 %v1640_v10, %v1635_v12 }
 0xe3a   :  { %v2214_v15 = vpop.eup %2213 }
 0xe3b   :  { %v1636_v16 = vmul.f32 %v2214_v15, %v2494_v33  ;;  %v1647_v17 = vadd.f32 %v1646_v13, %v1641_v14 }
 0xe3d   :  { %v1642_v18 = vmul.f32 %v1640_v10, %v1636_v16  ;;  %2063 = vmatprep.mubr.msk.f32.mxu1 %vm27_vm0, %v1647_v17 }
 0xe3f   :  { %v1648_v19 = vadd.f32 %v1646_v13, %v1642_v18 }
 0xe41   :  { %2064 = vmatmul.mubr.msk.f32.vlgmr.msra.gmra.mrb[22].mxu1 %vm27_vm0, %v1648_v19 }
 0xf14   :  { %v2065_v28 = vpop.f32.mrb[22].mxu1 }
 0xf15   :  { %v1735_v30 = vadd.f32 %v2065_v28, %v1656_v27  ;;  %v1729_v31 = vpop.f32.mrb[23].mxu1 }
 0xf16   :  { %v1730_v32 = vadd.f32 %v1729_v31, %v1656_v27 }
 0xf17   :  { %v1739_v1 = vmax.f32 %v1735_v30, 0.0 }
 0xf18   :  { %v1738_v33 = vmax.f32 %v1730_v32, 0.0 }
 0xf1a   :  { %2098 = vmatprep.mubr.f32.mxu0 %v1738_v33 }
 0xf1b   :  { %2099 = vmatmul.mubr.f32.vlgmr.msra.gmra.mrb[14].mxu0 %v1739_v1 }
 0xfee   :  { %v2100_v35 = vpop.f32.mrb[14].mxu0 }
 0xfef   :  { %v1832_v36 = vadd.f32 %v2100_v35, %v1759_v34  ;;  %v1826_v37 = vpop.f32.mrb[15].mxu0 }
 0xff0   :  { %v1827_v38 = vadd.f32 %v1826_v37, %v1759_v34 }
 0xff1   :  { %v1836_v39 = vadd.f32 %v1832_v36, %v2484_v23 }
 0xff2   :  { %v1835_v40 = vadd.f32 %v1827_v38, %v2487_v24 }
 0xff3   :  { %1838 = vst.msk [vmem:[#allocation3 + $0x8] sm:$0xff] %vm27_vm0, %v1836_v39 }
 0xff4   :  { %1837 = vst.msk [vmem:[#allocation3] sm:$0xff] %vm27_vm0, %v1835_v40 }
 0xff5   :  { %2226 = shalt.err (!%p2223_p4)
}
 0xff6   :  { %s2227_s3 = scalar_lea.hbm %s2600_s6, 256 }
 0xff7   :  { %p2228_p5 = scmp.ne.s32.totalorder %s2600_s6, %s2227_s3  ;;  %p2231_p6 = scmp.lt.u32.totalorder %s2227_s3, %s2600_s6 }
 0xff9   :  { %p2233_p7 = pnand %p2231_p6, %p2228_p5 }
 0xffb   :  { %2236 = shalt.err (!%p2233_p7)
}
 0xffc   :  { %s2256_s23 = smov 128  }
 0xffd   :  { %1850 = dma.vmem_to_hbm [thread:$0]  %s1845_s14, 256, %s2600_s6, [#allocation4], %s2256_s23, %s2256_s23, %s2252_s19  }
 0xffe   :  { %2237 = dma.done.wait [#allocation4], 256  }
 0xfff   :  { %2238 = vsyncadd [#allocation4], 4294967040 }
0x1000   :  { %1854 = vsyncpa [#allocation4], 1 }

</bundles_post_ra>
